<compile_context>
chip_gen: v7x
topology: tpu7x:2x2x1
jax: 0.10.0
libtpu: 0.0.40
codegen_flags: <defaults>
</compile_context>

<pallas_src>
import numpy as np
import jax
import jax.numpy as jnp
from jax.experimental import pallas as pl
from jax.experimental.pallas import tpu as pltpu

K = 3            # MaxPool2d(kernel_size=3); PyTorch stride defaults to kernel_size
LANES = 128      # TPU lane width

# ~4.5 MiB of pooled-window data per grid step (9 slabs x tile_r x 128 lanes).
# With double buffering (+ output buffers) this is ~10.5 MiB of VMEM for every
# dtype: inside v5e/v6e default scoped VMEM and v7x's smaller 64 MiB physical.
TARGET_IN_BLOCK_BYTES = 9 * 1024 * LANES * 4
VMEM_LIMIT_BYTES = 32 * 1024 * 1024


def _cdiv(a, b):
    return -(-a // b)


def _round_up(a, b):
    return _cdiv(a, b) * b


def _round_down(a, b):
    return (a // b) * b


def _maxpool9_kernel(x_ref, o_ref):
    # x_ref: (9, TILE_R, LANES) -- leading dim = flattened 3x3 window offset.
    # o_ref: (TILE_R, LANES)
    # Pairwise max tree: 8 elementwise maxima (pure VPU, lane-dense vregs),
    # one dense unmasked store per grid step.
    m01 = jnp.maximum(x_ref[0], x_ref[1])
    m23 = jnp.maximum(x_ref[2], x_ref[3])
    m45 = jnp.maximum(x_ref[4], x_ref[5])
    m67 = jnp.maximum(x_ref[6], x_ref[7])
    m03 = jnp.maximum(m01, m23)
    m47 = jnp.maximum(m45, m67)
    o_ref[...] = jnp.maximum(jnp.maximum(m03, m47), x_ref[8])


def maxpool2d_k3_ceil(x):
    """MaxPool2d(kernel_size=3, stride=3, ceil_mode=True) over NCHW input."""
    n, c, h, w = x.shape
    oh = _cdiv(max(h - K, 0), K) + 1   # ceil-mode output size
    ow = _cdiv(max(w - K, 0), K) + 1
    hp, wp = oh * K, ow * K
    nc = n * c
    dtype = x.dtype
    esize = np.dtype(dtype).itemsize

    if jnp.issubdtype(dtype, jnp.floating):
        pad_val = -jnp.inf            # padded cells never win the max
    else:
        pad_val = jnp.iinfo(dtype).min

    # --- relayout: one fusable pad -> reshape -> transpose pass -------------
    xf = x.reshape(nc, h, w)
    if (hp, wp) != (h, w):
        # Ragged ceil-mode edge only (<= 2 rows / cols); skipped when H, W are
        # already multiples of 3.
        xf = jnp.pad(xf, ((0, 0), (0, hp - h), (0, wp - w)),
                     constant_values=pad_val)

    # (nc, oh, K, ow, K) -> (K, K, nc, oh, ow): window offsets lead, flattened
    # output index (nc*oh*ow) is minor and lane-dense; pooling becomes purely
    # elementwise and the result comes back already in (nc, oh, ow) order.
    xt = xf.reshape(nc, oh, K, ow, K).transpose(2, 4, 0, 1, 3)
    m = nc * oh * ow
    xt = xt.reshape(K * K, m)

    # Pad the flat index only to a multiple of 128 lanes (review #2); the last
    # grid block may be partial and is clipped on write-back.
    mp = _round_up(m, LANES)
    if mp != m:
        xt = jnp.pad(xt, ((0, 0), (0, mp - m)), constant_values=pad_val)
    rows = mp // LANES
    xt = xt.reshape(K * K, rows, LANES)

    # --- tiling (reviews #3, #4, #6) -----------------------------------------
    sub = max(8, 32 // esize)                       # dtype-aware sublane multiple
    tile_r_max = max(
        sub, _round_down(TARGET_IN_BLOCK_BYTES // (K * K * LANES * esize), sub))
    # Prefer >= 2 grid steps when there is enough data so the "parallel" axis
    # can feed both TensorCores on v7x (harmless on v5e/v6e).
    tile_r = min(tile_r_max, max(sub, _round_up(_cdiv(rows, 2), sub)))
    num_tiles = _cdiv(rows, tile_r)

    out = pl.pallas_call(
        _maxpool9_kernel,
        out_shape=jax.ShapeDtypeStruct((rows, LANES), dtype),
        grid=(num_tiles,),
        in_specs=[pl.BlockSpec((K * K, tile_r, LANES), lambda i: (0, i, 0))],
        out_specs=pl.BlockSpec((tile_r, LANES), lambda i: (i, 0)),
        compiler_params=pltpu.CompilerParams(
            dimension_semantics=("parallel",),
            vmem_limit_bytes=VMEM_LIMIT_BYTES),
    )(xt)

    # Drop lane padding; data is already in (nc, oh, ow) order.
    return out.reshape(mp)[:m].reshape(n, c, oh, ow)


def _ref_maxpool(xn):
    # PyTorch MaxPool2d(3, ceil_mode=True) reference (max over valid window cells).
    n, c, h, w = xn.shape
    oh = _cdiv(max(h - K, 0), K) + 1
    ow = _cdiv(max(w - K, 0), K) + 1
    out = np.empty((n, c, oh, ow), dtype=xn.dtype)
    for i in range(oh):
        for j in range(ow):
            out[:, :, i, j] = xn[:, :, i * K:min(i * K + K, h),
                                       j * K:min(j * K + K, w)].max(axis=(2, 3))
    return out


if __name__ == "__main__":
    key = jax.random.PRNGKey(0)
    k1, k2, k3, k4 = jax.random.split(key, 4)

    test_inputs = [
        # Shape the original module implies: input.reshape(-1, 1, 5, 5).
        jax.random.normal(k1, (2, 1, 5, 5), dtype=jnp.float32),
        # Multi-channel + ragged ceil-mode edge, flat size not 128-aligned.
        jax.random.normal(k2, (2, 4, 16, 16), dtype=jnp.float32),
        # H, W multiples of 3 and flat size exactly 128 (no pads at all).
        jax.random.normal(k3, (2, 4, 12, 12), dtype=jnp.float32),
        # Larger case exercising the multi-tile ("parallel") grid path.
        jax.random.normal(k4, (2, 8, 48, 48), dtype=jnp.float32),
    ]

    for x in test_inputs:
        out = maxpool2d_k3_ceil(x)
        jax.block_until_ready(out)
        ref = _ref_maxpool(np.asarray(x))
        assert out.shape == ref.shape, (out.shape, ref.shape)
        assert np.allclose(np.asarray(out), ref), (x.shape,)

    print("KERNEL_OK")
</pallas_src>

<mosaic_0001>
module attributes {stable_mosaic.version = 11 : i64} {
  func.func @_maxpool9_kernel(%arg0: i32, %arg1: memref<9x8x128xf32, #tpu.memory_space<vmem>>, %arg2: memref<8x128xf32, #tpu.memory_space<vmem>>) attributes {dimension_semantics = [#tpu.dimension_semantics<parallel>], iteration_bounds = array<i64: 1>, scalar_prefetch = 0 : i64, scratch_operands = 0 : i64, tpu.core_type = #tpu.core_type<tc>, window_params = [{transform_indices = @transform_0, window_bounds = array<i64: 9, 8, 128>}, {transform_indices = @transform_1, window_bounds = array<i64: 8, 128>}]} {
    %c0 = arith.constant 0 : index
    %c0_0 = arith.constant 0 : index
    %c0_1 = arith.constant 0 : index
    %0 = vector.load %arg1[%c0, %c0_0, %c0_1] : memref<9x8x128xf32, #tpu.memory_space<vmem>>, vector<1x8x128xf32>
    %1 = vector.shape_cast %0 : vector<1x8x128xf32> to vector<8x128xf32>
    %c1 = arith.constant 1 : index
    %c0_2 = arith.constant 0 : index
    %c0_3 = arith.constant 0 : index
    %2 = vector.load %arg1[%c1, %c0_2, %c0_3] : memref<9x8x128xf32, #tpu.memory_space<vmem>>, vector<1x8x128xf32>
    %3 = vector.shape_cast %2 : vector<1x8x128xf32> to vector<8x128xf32>
    %4 = arith.maximumf %1, %3 : vector<8x128xf32>
    %c2 = arith.constant 2 : index
    %c0_4 = arith.constant 0 : index
    %c0_5 = arith.constant 0 : index
    %5 = vector.load %arg1[%c2, %c0_4, %c0_5] : memref<9x8x128xf32, #tpu.memory_space<vmem>>, vector<1x8x128xf32>
    %6 = vector.shape_cast %5 : vector<1x8x128xf32> to vector<8x128xf32>
    %c3 = arith.constant 3 : index
    %c0_6 = arith.constant 0 : index
    %c0_7 = arith.constant 0 : index
    %7 = vector.load %arg1[%c3, %c0_6, %c0_7] : memref<9x8x128xf32, #tpu.memory_space<vmem>>, vector<1x8x128xf32>
    %8 = vector.shape_cast %7 : vector<1x8x128xf32> to vector<8x128xf32>
    %9 = arith.maximumf %6, %8 : vector<8x128xf32>
    %c4 = arith.constant 4 : index
    %c0_8 = arith.constant 0 : index
    %c0_9 = arith.constant 0 : index
    %10 = vector.load %arg1[%c4, %c0_8, %c0_9] : memref<9x8x128xf32, #tpu.memory_space<vmem>>, vector<1x8x128xf32>
    %11 = vector.shape_cast %10 : vector<1x8x128xf32> to vector<8x128xf32>
    %c5 = arith.constant 5 : index
    %c0_10 = arith.constant 0 : index
    %c0_11 = arith.constant 0 : index
    %12 = vector.load %arg1[%c5, %c0_10, %c0_11] : memref<9x8x128xf32, #tpu.memory_space<vmem>>, vector<1x8x128xf32>
    %13 = vector.shape_cast %12 : vector<1x8x128xf32> to vector<8x128xf32>
    %14 = arith.maximumf %11, %13 : vector<8x128xf32>
    %c6 = arith.constant 6 : index
    %c0_12 = arith.constant 0 : index
    %c0_13 = arith.constant 0 : index
    %15 = vector.load %arg1[%c6, %c0_12, %c0_13] : memref<9x8x128xf32, #tpu.memory_space<vmem>>, vector<1x8x128xf32>
    %16 = vector.shape_cast %15 : vector<1x8x128xf32> to vector<8x128xf32>
    %c7 = arith.constant 7 : index
    %c0_14 = arith.constant 0 : index
    %c0_15 = arith.constant 0 : index
    %17 = vector.load %arg1[%c7, %c0_14, %c0_15] : memref<9x8x128xf32, #tpu.memory_space<vmem>>, vector<1x8x128xf32>
    %18 = vector.shape_cast %17 : vector<1x8x128xf32> to vector<8x128xf32>
    %19 = arith.maximumf %16, %18 : vector<8x128xf32>
    %20 = arith.maximumf %4, %9 : vector<8x128xf32>
    %21 = arith.maximumf %14, %19 : vector<8x128xf32>
    %22 = arith.maximumf %20, %21 : vector<8x128xf32>
    %c8 = arith.constant 8 : index
    %c0_16 = arith.constant 0 : index
    %c0_17 = arith.constant 0 : index
    %23 = vector.load %arg1[%c8, %c0_16, %c0_17] : memref<9x8x128xf32, #tpu.memory_space<vmem>>, vector<1x8x128xf32>
    %24 = vector.shape_cast %23 : vector<1x8x128xf32> to vector<8x128xf32>
    %25 = arith.maximumf %22, %24 : vector<8x128xf32>
    %c0_18 = arith.constant 0 : index
    %c0_19 = arith.constant 0 : index
    %26 = vector.load %arg2[%c0_18, %c0_19] : memref<8x128xf32, #tpu.memory_space<vmem>>, vector<8x128xf32>
    tpu.vector_store %arg2[%c0_18, %c0_19], %25 {strides = array<i32>} : memref<8x128xf32, #tpu.memory_space<vmem>>, vector<8x128xf32>,
    return
  }
  func.func @transform_0(%arg0: i32) -> (i32, i32, i32) {
    %c0_i32 = arith.constant 0 : i32
    %c0_i32_0 = arith.constant 0 : i32
    %c0_i32_1 = arith.constant 0 : i32
    return %c0_i32, %arg0, %c0_i32_0 : i32, i32, i32
  }
  func.func @transform_1(%arg0: i32) -> (i32, i32) {
    %c0_i32 = arith.constant 0 : i32
    %c0_i32_0 = arith.constant 0 : i32
    return %arg0, %c0_i32 : i32, i32
  }
}

</mosaic_0001>

<bundles_post_ra>
// kernel: tpu_custom_call.1
= control target key start
LH: loop header
LB: loop body
LE: loop exit
PB: predicated region body
PF: predicated region fallthrough
CT: control target
= control target key end

     0   :  { %6 = vsyncpa [#allocation3], 0  ;;  %s162_s0 = inlined_call_operand.hbm [shape: f32[9,1,128], index: 0, kind: input, shape index: {}]   ;;  %s163_s1 = inlined_call_operand.hbm [shape: f32[1,128], index: 1, kind: output, shape index: {}]  }
   0x1   :  { %7 = vsyncpa [#allocation4], 0 }
   0x2   :  { %12 = vsyncadd [#allocation3], 1008  ;;  %s17_s6 = sld [smem:[#allocation0]]   ;;  %s128_s7 = smov [#allocation2]  }
   0x3   :  { %s25_s8 = sshll.u32 %s128_s7, 4  ;;  %s129_s9 = smov 16   ;;  %s26_s8 = int_to_ptr.vmem [resolvable:$true] %s25_s8 }
   0x4   :  { %32 = sst [smem:[#allocation7]] %s129_s9  ;;  %s130_s10 = smov 128  }
   0x5   :  { %34 = sst [smem:[#allocation7 + $0x1]] %s130_s10  ;;  %s131_s11 = smov 1  }
   0x6   :  { %36 = sst [smem:[#allocation7 + $0x2]] %s131_s11  ;;  %s132_s14 = smov [#allocation3]  }
   0x7   :  { %38 = sst [smem:[#allocation7 + $0x3]] %s129_s9  ;;  %s133_s15 = smov [#allocation6]  }
   0x8   :  { %s91_s12 = sshll.u32 %s17_s6, 26  ;;  %40 = sst [smem:[#allocation7 + $0x4]] %s129_s9 }
   0x9   :  { %s92_s13 = sadd.s32 134217728, %s91_s12  ;;  %42 = sst [smem:[#allocation7 + $0x5]] %s131_s11 }
   0xa   :  { %44 = dma.general %s162_s0, 144, %s26_s8, %s132_s14, %s133_s15, [#allocation7], %s92_s13, 0  }
   0xb   :  { %124 = dma.done.wait [#allocation3], 1152  }
   0xc   :  { %125 = vsyncadd [#allocation3], 4294966144  ;;  %v48_v0 = vld [vmem:[#allocation2] sm:$0xff]  ;;  %v50_v1 = vld [vmem:[#allocation2 + $0x8] sm:$0xff] }
   0xd   :  { %v53_v2 = vld [vmem:[#allocation2 + $0x10] sm:$0xff]  ;;  %v51_v3 = vmax.f32 %v48_v0, %v50_v1  ;;  %v55_v4 = vld [vmem:[#allocation2 + $0x18] sm:$0xff]  ;;  %v58_v5 = vld [vmem:[#allocation2 + $0x20] sm:$0xff] }
   0xe   :  { %v60_v6 = vld [vmem:[#allocation2 + $0x28] sm:$0xff]  ;;  %v56_v7 = vmax.f32 %v53_v2, %v55_v4  ;;  %v63_v9 = vld [vmem:[#allocation2 + $0x30] sm:$0xff]  ;;  %v65_v10 = vld [vmem:[#allocation2 + $0x38] sm:$0xff] }
   0xf   :  { %v61_v8 = vmax.f32 %v58_v5, %v60_v6  ;;  %v66_v11 = vmax.f32 %v63_v9, %v65_v10  ;;  %v71_v14 = vld [vmem:[#allocation2 + $0x40] sm:$0xff] }
  0x10   :  { %v67_v12 = vmax.f32 %v51_v3, %v56_v7 }
  0x11   :  { %v68_v13 = vmax.f32 %v61_v8, %v66_v11 }
  0x13   :  { %v69_v15 = vmax.f32 %v67_v12, %v68_v13 }
  0x15   :  { %v72_v16 = vmax.f32 %v69_v15, %v71_v14 }
  0x17   :  { %73 = vst [vmem:[#allocation5] sm:$0xff] %v72_v16 }
  0x18   :  { %78 = vsyncadd [#allocation4], 112  ;;  %s134_s0 = smov [#allocation5]  }
  0x19   :  { %s79_s18 = sshll.u32 %s134_s0, 4  ;;  %s80_s18 = int_to_ptr.vmem [resolvable:$true] %s79_s18 }
  0x1a   :  { %s102_s19 = scalar_lea.vmem %s80_s18, 16  ;;  %s106_s20 = scalar_lea.vmem %s80_s18, 128 }
  0x1b   :  { %p103_p0 = scmp.ne.s32.totalorder %s80_s18, %s102_s19  ;;  %p107_p1 = scmp.lt.s32.totalorder %s80_s18, %s80_s18 }
  0x1c   :  { %p108_p2 = scmp.lt.s32.totalorder %s106_s20, %s102_s19 }
  0x1e   :  { %p109_p3 = por %p108_p2, %p107_p1 }
  0x20   :  { %p110_p4 = pnand %p109_p3, %p103_p0 }
  0x22   :  { %113 = shalt.err (!%p110_p4)
}
  0x23   :  { %s114_s23 = scalar_lea.hbm %s163_s1, 16 }
  0x24   :  { %p115_p5 = scmp.ne.s32.totalorder %s163_s1, %s114_s23  ;;  %p118_p6 = scmp.lt.u32.totalorder %s114_s23, %s163_s1 }
  0x26   :  { %p120_p7 = pnand %p118_p6, %p115_p5 }
  0x28   :  { %123 = shalt.err (!%p120_p7)
}
  0x29   :  { %s135_s28 = smov 16   ;;  %s136_s29 = smov 1  }
  0x2a   :  { %85 = dma.vmem_to_hbm [thread:$0]  %s80_s18, 16, %s163_s1, [#allocation4], %s135_s28, %s135_s28, %s136_s29  }
  0x2b   :  { %126 = dma.done.wait [#allocation4], 128  }
  0x2c   :  { %127 = vsyncadd [#allocation4], 4294967168 }
  0x2d   :  { %89 = vsyncpa [#allocation3], 1 }
  0x2e   :  { %90 = vsyncpa [#allocation4], 1 }

</bundles_post_ra>
